<compile_context>
chip_gen: v7x
topology: tpu7x:2x2x1
jax: 0.10.0
libtpu: 0.0.40
codegen_flags: <defaults>
</compile_context>

<pallas_src>
import jax
import jax.numpy as jnp
from jax.experimental import pallas as pl
from jax.experimental.pallas import tpu as pltpu


# Packed parameter layout (rows, all segment starts are multiples of 8 sublanes):
#   rows  0:24 -> W1^T (24, 5)   / b1 (24, 1)
#   rows 24:36 -> W2^T (12, 24)  / b2 (12, 1)
#   row  40:41 -> W34^T (1, 12)  / b34 (1, 1)   (W34 = W3 @ W4 folded)
_PACK_ROWS = 48
_PACK_COLS = 24


def ffn_kernel(x_ref, w_ref, b_ref, o_ref):
    """x_ref: (5, TB); w_ref: (48, 24) packed; b_ref: (48, 1) packed; o_ref: (1, TB)."""
    x = x_ref[...]            # (5, TB) — batch on the lane axis
    W = w_ref[...]            # packed transposed weights, resident in VMEM
    Bv = b_ref[...]           # packed biases (column vectors, lane-broadcast)

    # Layer 1: (24,5) @ (5,TB) -> (24,TB), + bias, ReLU
    h = jnp.dot(W[0:24, 0:5], x, preferred_element_type=jnp.float32) + Bv[0:24, :]
    h = jnp.maximum(h, 0.0)
    # Layer 2: (12,24) @ (24,TB) -> (12,TB), + bias, ReLU
    h = jnp.dot(W[24:36, 0:24], h, preferred_element_type=jnp.float32) + Bv[24:36, :]
    h = jnp.maximum(h, 0.0)
    # Folded layers 3+4: (1,12) @ (12,TB) -> (1,TB), + bias (no nonlinearity)
    h = jnp.dot(W[40:41, 0:12], h, preferred_element_type=jnp.float32) + Bv[40:41, :]

    o_ref[...] = h.astype(o_ref.dtype)


def _pack_params(params):
    """Fold layers 3+4, transpose everything, and pack into two small blocks."""
    (w1, b1), (w2, b2), (w3, b3), (w4, b4) = params
    w34 = w3 @ w4                 # (12, 1)
    b34 = b3 @ w4 + b4            # (1, 1)

    w_pack = jnp.zeros((_PACK_ROWS, _PACK_COLS), jnp.float32)
    w_pack = w_pack.at[0:24, 0:5].set(w1.T)        # (24, 5)
    w_pack = w_pack.at[24:36, 0:24].set(w2.T)      # (12, 24)
    w_pack = w_pack.at[40:41, 0:12].set(w34.T)     # (1, 12)

    b_pack = jnp.zeros((_PACK_ROWS, 1), jnp.float32)
    b_pack = b_pack.at[0:24, :].set(b1.T)          # (24, 1)
    b_pack = b_pack.at[24:36, :].set(b2.T)         # (12, 1)
    b_pack = b_pack.at[40:41, :].set(b34)          # (1, 1)
    return w_pack, b_pack


def _round_up(n, m):
    return ((n + m - 1) // m) * m


def _pick_batch_tile(B, batch_tile):
    """Lane-dense batch tile: must be a multiple of 128 unless it equals B."""
    if B <= batch_tile:
        if B > 256:
            # Split into >=2 parallel grid steps so both v7x TensorCores get work.
            tb = min(B, _round_up(pl.cdiv(B, 2), 128))
            return tb if (tb % 128 == 0) else B
        return B
    tb = max(128, (batch_tile // 128) * 128)
    return B if tb >= B else tb


def feed_forward(x, params, *, batch_tile=1024):
    """x: (B, 5) float32 -> (B, 1) float32 (same semantics as the PyTorch module)."""
    B, F_in = x.shape
    assert F_in == 5

    w_pack, b_pack = _pack_params(params)
    xt = x.T                                   # (5, B): batch on the lane axis

    TB = _pick_batch_tile(B, batch_tile)
    grid = (pl.cdiv(B, TB),)

    out_t = pl.pallas_call(
        ffn_kernel,
        out_shape=jax.ShapeDtypeStruct((1, B), x.dtype),
        grid=grid,
        in_specs=[
            pl.BlockSpec((5, TB), lambda i: (0, i)),                    # x tile (lane-dense)
            pl.BlockSpec((_PACK_ROWS, _PACK_COLS), lambda i: (0, 0)),   # packed weights
            pl.BlockSpec((_PACK_ROWS, 1), lambda i: (0, 0)),            # packed biases
        ],
        out_specs=pl.BlockSpec((1, TB), lambda i: (0, i)),
        compiler_params=pltpu.CompilerParams(
            dimension_semantics=("parallel",),
            vmem_limit_bytes=16 * 1024 * 1024,   # tiny actual usage; safe on v5e/v6e/v7x
        ),
    )(xt, w_pack, b_pack)

    return out_t.reshape(B, 1)


def init_params(key):
    """Deterministic init matching PyTorch nn.Linear shapes (U(-1/sqrt(fan_in), +))."""
    dims = [(5, 24), (24, 12), (12, 6), (6, 1)]
    params = []
    for (fan_in, fan_out) in dims:
        key, kw, kb = jax.random.split(key, 3)
        bound = 1.0 / jnp.sqrt(fan_in)
        w = jax.random.uniform(kw, (fan_in, fan_out), jnp.float32, -bound, bound)
        b = jax.random.uniform(kb, (1, fan_out), jnp.float32, -bound, bound)
        params.append((w, b))
    return params


def reference(x, params):
    """Pure-JAX reference using the ORIGINAL (unfolded, untransposed) params."""
    (w1, b1), (w2, b2), (w3, b3), (w4, b4) = params
    h = jnp.maximum(x @ w1 + b1, 0.0)
    h = jnp.maximum(h @ w2 + b2, 0.0)
    h = h @ w3 + b3
    h = h @ w4 + b4
    return h


if __name__ == "__main__":
    key = jax.random.PRNGKey(0)
    key, kx, kx2 = jax.random.split(key, 3)
    params = init_params(key)

    # Small-shape correctness check (single grid step, TB == B).
    B = 8
    x = jax.random.normal(kx, (B, 5), jnp.float32)
    out = jax.block_until_ready(feed_forward(x, params))
    ref = reference(x, params)
    assert out.shape == (B, 1), out.shape
    assert jnp.allclose(out, ref, atol=1e-4, rtol=1e-4), (out, ref)

    # Multi-tile path: 2 parallel grid steps, partial (padded) last block.
    B2 = 300
    x2 = jax.random.normal(kx2, (B2, 5), jnp.float32)
    out2 = jax.block_until_ready(feed_forward(x2, params))
    ref2 = reference(x2, params)
    assert out2.shape == (B2, 1), out2.shape
    assert jnp.allclose(out2, ref2, atol=1e-4, rtol=1e-4), (out2, ref2)

    print("KERNEL_OK")
</pallas_src>

<mosaic_0001>
module attributes {stable_mosaic.version = 11 : i64} {
  func.func @ffn_kernel(%arg0: i32, %arg1: memref<5x8xf32, #tpu.memory_space<vmem>>, %arg2: memref<48x24xf32, #tpu.memory_space<vmem>>, %arg3: memref<48x1xf32, #tpu.memory_space<vmem>>, %arg4: memref<1x8xf32, #tpu.memory_space<vmem>>) attributes {dimension_semantics = [#tpu.dimension_semantics<parallel>], iteration_bounds = array<i64: 1>, scalar_prefetch = 0 : i64, scratch_operands = 0 : i64, tpu.core_type = #tpu.core_type<tc>, window_params = [{transform_indices = @transform_0, window_bounds = array<i64: 5, 8>}, {pipeline_mode = #tpu.pipeline_mode<synchronous>, transform_indices = @transform_1, window_bounds = array<i64: 48, 24>}, {pipeline_mode = #tpu.pipeline_mode<synchronous>, transform_indices = @transform_2, window_bounds = array<i64: 48, 1>}, {transform_indices = @transform_3, window_bounds = array<i64: 1, 8>}]} {
    %c0 = arith.constant 0 : index
    %c0_0 = arith.constant 0 : index
    %0 = vector.load %arg1[%c0, %c0_0] : memref<5x8xf32, #tpu.memory_space<vmem>>, vector<5x8xf32>
    %c0_1 = arith.constant 0 : index
    %c0_2 = arith.constant 0 : index
    %1 = vector.load %arg2[%c0_1, %c0_2] : memref<48x24xf32, #tpu.memory_space<vmem>>, vector<48x24xf32>
    %c0_3 = arith.constant 0 : index
    %c0_4 = arith.constant 0 : index
    %2 = vector.load %arg3[%c0_3, %c0_4] : memref<48x1xf32, #tpu.memory_space<vmem>>, vector<48x1xf32>
    %3 = vector.extract_strided_slice %1 {offsets = [0, 0], sizes = [24, 5], strides = [1, 1]} : vector<48x24xf32> to vector<24x5xf32>
    %cst = arith.constant dense<0.000000e+00> : vector<24x8xf32>
    %4 = tpu.matmul %3, %0, %cst {dimension_numbers = #tpu.dot_dimension_numbers<[1], [0], [0], [1], [0, 0, 1, 1], [], []>} : vector<24x5xf32>, vector<5x8xf32>, vector<24x8xf32> -> vector<24x8xf32>
    %5 = vector.extract_strided_slice %2 {offsets = [0, 0], sizes = [24, 1], strides = [1, 1]} : vector<48x1xf32> to vector<24x1xf32>
    %6 = vector.broadcast %5 : vector<24x1xf32> to vector<24x8xf32>
    %7 = arith.addf %4, %6 : vector<24x8xf32>
    %cst_5 = arith.constant 0.000000e+00 : f32
    %8 = vector.broadcast %cst_5 : f32 to vector<24x8xf32>
    %9 = arith.maximumf %7, %8 : vector<24x8xf32>
    %10 = vector.extract_strided_slice %1 {offsets = [24, 0], sizes = [12, 24], strides = [1, 1]} : vector<48x24xf32> to vector<12x24xf32>
    %cst_6 = arith.constant dense<0.000000e+00> : vector<12x8xf32>
    %11 = tpu.matmul %10, %9, %cst_6 {dimension_numbers = #tpu.dot_dimension_numbers<[1], [0], [0], [1], [0, 0, 1, 1], [], []>} : vector<12x24xf32>, vector<24x8xf32>, vector<12x8xf32> -> vector<12x8xf32>
    %12 = vector.extract_strided_slice %2 {offsets = [24, 0], sizes = [12, 1], strides = [1, 1]} : vector<48x1xf32> to vector<12x1xf32>
    %13 = vector.broadcast %12 : vector<12x1xf32> to vector<12x8xf32>
    %14 = arith.addf %11, %13 : vector<12x8xf32>
    %cst_7 = arith.constant 0.000000e+00 : f32
    %15 = vector.broadcast %cst_7 : f32 to vector<12x8xf32>
    %16 = arith.maximumf %14, %15 : vector<12x8xf32>
    %17 = vector.extract_strided_slice %1 {offsets = [40, 0], sizes = [1, 12], strides = [1, 1]} : vector<48x24xf32> to vector<1x12xf32>
    %cst_8 = arith.constant dense<0.000000e+00> : vector<1x8xf32>
    %18 = tpu.matmul %17, %16, %cst_8 {dimension_numbers = #tpu.dot_dimension_numbers<[1], [0], [0], [1], [0, 0, 1, 1], [], []>} : vector<1x12xf32>, vector<12x8xf32>, vector<1x8xf32> -> vector<1x8xf32>
    %19 = vector.extract_strided_slice %2 {offsets = [40, 0], sizes = [1, 1], strides = [1, 1]} : vector<48x1xf32> to vector<1x1xf32>
    %20 = vector.broadcast %19 : vector<1x1xf32> to vector<1x8xf32>
    %21 = arith.addf %18, %20 : vector<1x8xf32>
    %c0_9 = arith.constant 0 : index
    %c0_10 = arith.constant 0 : index
    %22 = vector.load %arg4[%c0_9, %c0_10] : memref<1x8xf32, #tpu.memory_space<vmem>>, vector<1x8xf32>
    tpu.vector_store %arg4[%c0_9, %c0_10], %21 {strides = array<i32>} : memref<1x8xf32, #tpu.memory_space<vmem>>, vector<1x8xf32>,
    return
  }
  func.func @transform_0(%arg0: i32) -> (i32, i32) {
    %c0_i32 = arith.constant 0 : i32
    %c0_i32_0 = arith.constant 0 : i32
    return %c0_i32, %arg0 : i32, i32
  }
  func.func @transform_1(%arg0: i32) -> (i32, i32) {
    %c0_i32 = arith.constant 0 : i32
    %c0_i32_0 = arith.constant 0 : i32
    %c0_i32_1 = arith.constant 0 : i32
    return %c0_i32, %c0_i32_0 : i32, i32
  }
  func.func @transform_2(%arg0: i32) -> (i32, i32) {
    %c0_i32 = arith.constant 0 : i32
    %c0_i32_0 = arith.constant 0 : i32
    %c0_i32_1 = arith.constant 0 : i32
    return %c0_i32, %c0_i32_0 : i32, i32
  }
  func.func @transform_3(%arg0: i32) -> (i32, i32) {
    %c0_i32 = arith.constant 0 : i32
    %c0_i32_0 = arith.constant 0 : i32
    return %c0_i32, %arg0 : i32, i32
  }
}

</mosaic_0001>

<bundles_post_ra>
// kernel: tpu_custom_call.1
= control target key start
LH: loop header
LB: loop body
LE: loop exit
PB: predicated region body
PF: predicated region fallthrough
CT: control target
= control target key end

     0   :  { %vm53_vm0 = vcmask 1044480   ;;  %v420_v2 = vmov 0.0   ;;  %vm421_vm1 = vmmov 0   ;;  %vm43_vm2 = vcmask 39936   ;;  %s506_s0 = inlined_call_operand.vmem [shape: f32[5,8], index: 0, kind: input, shape index: {}]   ;;  %s507_s1 = inlined_call_operand.vmem [shape: f32[48,24], index: 1, kind: input, shape index: {}]   ;;  %s508_s2 = inlined_call_operand.vmem [shape: f32[48,1], index: 2, kind: input, shape index: {}]   ;;  %s509_s3 = inlined_call_operand.hbm [shape: f32[1,8], index: 3, kind: output, shape index: {}]  }
   0x1   :  { %v15_v0 = vld [vmem:[%s506_s0] sm:$0x1f]  ;;  %353 = vmatprep.subr.mxu0 %v420_v2  ;;  %355 = vmatprep.mubr.msk.f32.mxu0 %vm421_vm1, %v420_v2  ;;  %v422_v4 = vmov 0   ;;  %v24_v5 = vld [vmem:[%s508_s2 + $0x10] sm:$0xff] }
   0x2   :  { %v16_v1 = vld [vmem:[%s507_s1] sm:$0xff]  ;;  %354 = vmatpush3.msk.msra.mxu0 %vm53_vm0, %v15_v0  ;;  %394 = vset.pattern.permute.xlu0 %v422_v4 }
   0x3   :  { %v22_v3 = vld [vmem:[%s508_s2] sm:$0xff]  ;;  %356 = vmatmul.mubr.msk.f32.vlgmr.msra.gmra.mrb[0].mxu0 %vm43_vm2, %v16_v1 }
   0x4   :  { %30 = vperm.xlu0 %394, %v22_v3  }
   0x5   :  { %8 = vsyncpa [#allocation3], 0  ;;  %358 = vmatprep.mubr.msk.f32.mxu0 %vm421_vm1, %v420_v2  ;;  %v17_v6 = vld [vmem:[%s507_s1 + $0x8] sm:$0xff]  ;;  %395 = vset.pattern.permute.xlu1 %v422_v4  ;;  %v25_v8 = vld [vmem:[%s508_s2 + $0x18] sm:$0xff]  ;;  %vm150_vm3 = vcmask 195584   ;;  %v423_v30 = vmov 0.0|0.0  }
   0x6   :  { %v23_v7 = vld [vmem:[%s508_s2 + $0x8] sm:$0xff]  ;;  %40 = vperm.xlu1 %395, %v24_v5   ;;  %v18_v9 = vld [vmem:[%s507_s1 + $0x10] sm:$0xff]  ;;  %v26_v10 = vld [vmem:[%s508_s2 + $0x20] sm:$0xff]  ;;  %vm243_vm4 = vcmask 1043456   ;;  %vm424_vm5 = vmmov 1   ;;  %vm239_vm7 = vcmask 97280  }
   0x7   :  { %359 = vmatmul.mubr.msk.f32.gmra.mrb[2].mxu0 %vm43_vm2, %v17_v6  ;;  %v27_v11 = vld [vmem:[%s508_s2 + $0x28] sm:$0xff]  ;;  %v19_v12 = vld [vmem:[%s507_s1 + $0x18] sm:$0xff]  ;;  %v20_v29 = vld [vmem:[%s507_s1 + $0x20] sm:$0xff]  ;;  %s425_s9 = smov [#allocation2]   ;;  %vm317_vm8 = vcmask 57344  }
   0x8   :  { %35 = vperm.xlu0 %394, %v23_v7   ;;  %361 = vmatprep.mubr.msk.f32.mxu0 %vm421_vm1, %v420_v2  ;;  %vm386_vm6 = vmpackc.low %vm243_vm4, %vm424_vm5  ;;  %v21_v40 = vld [vmem:[%s507_s1 + $0x28] sm:$0xff]  ;;  %s325_s10 = sshll.u32 %s425_s9, 4  ;;  %s326_s10 = int_to_ptr.vmem [resolvable:$true] %s325_s10 }
   0x9   :  { %370 = vmatprep.mubr.msk.f32.mxu1 %vm150_vm3, %v19_v12  ;;  %s396_s11 = scalar_lea.vmem %s326_s10, 16  ;;  %s400_s12 = scalar_lea.vmem %s326_s10, 32 }
   0xa   :  { %142 = vperm.xlu1 %395, %v25_v8   ;;  %p397_p0 = scmp.ne.s32.totalorder %s326_s10, %s396_s11  ;;  %p401_p1 = scmp.lt.s32.totalorder %s326_s10, %s326_s10 }
   0xb   :  { %362 = vmatmul.mubr.msk.f32.gmra.mrb[4].mxu0 %vm43_vm2, %v18_v9  ;;  %p402_p2 = scmp.lt.s32.totalorder %s400_s12, %s396_s11 }
   0xc   :  { %147 = vperm.xlu0 %394, %v26_v10  }
   0xd   :  { %p403_p3 = por %p402_p2, %p401_p1 }
   0xe   :  { %236 = vperm.xlu1 %395, %v27_v11  }
   0xf   :  { %p404_p4 = pnand %p403_p3, %p397_p0 }
  0x83   :  { %v31_v13 = vpop.permute.xlu0 %30 }
  0x85   :  { %v41_v23 = vpop.permute.xlu1 %40 }
  0x87   :  { %v36_v17 = vpop.permute.xlu0 %35 }
  0x89   :  { %v143_v33 = vpop.permute.xlu1 %142 }
  0x8b   :  { %v148_v31 = vpop.permute.xlu0 %147 }
  0x8d   :  { %v237_v41 = vpop.permute.xlu1 %236 }
  0xd6   :  { %v123_v14 = vpop.f32.mrb[0].mxu0 }
  0xd7   :  { %v357_v15 = vpop.f32.mrb[1].mxu0  ;;  %v124_v16 = vadd.f32 %v123_v14, %v31_v13 }
  0xd9   :  { %v137_v21 = vmax.f32 %v124_v16, 0.0 }
  0xda   :  { %v128_v18 = vpop.f32.mrb[2].mxu0 }
  0xdb   :  { %v129_v19 = vadd.f32 %v128_v18, %v36_v17  ;;  %v360_v20 = vpop.f32.mrb[3].mxu0 }
  0xdd   :  { %v138_v22 = vmax.f32 %v129_v19, 0.0 }
  0xde   :  { %v133_v24 = vpop.f32.mrb[4].mxu0 }
  0xdf   :  { %v134_v25 = vadd.f32 %v133_v24, %v41_v23  ;;  %v363_v26 = vpop.f32.mrb[5].mxu0  ;;  %v380_v27 = vpack.c.bf16 %v138_v22, %v137_v21 }
  0xe1   :  { %v139_v28 = vmax.f32 %v134_v25, 0.0  ;;  %381 = vmatprep.subr.bf16.mxu1 %v380_v27 }
  0xe2   :  { %383 = vmatpush3.bf16.msra.mxu1 %v380_v27 }
  0xe3   :  { %368 = vmatprep.subr.mxu1 %v139_v28 }
  0xe6   :  { %369 = vmatpush3.msra.mxu1 %v139_v28 }
  0xe7   :  { %371 = vmatmul.mubr.msk.f32.vlgmr.msra.gmra.mrb[0].mxu1 %vm150_vm3, %v20_v29  ;;  %384 = vmatprep.subr.bf16.mxu1 %v423_v30 }
  0xe8   :  { %377 = vmatprep.mubr.msk.f32.mxu1 %vm421_vm1, %v420_v2 }
 0x1ba   :  { %v372_v32 = vpop.f32.mrb[0].mxu1 }
 0x1bb   :  { %v229_v34 = vadd.f32 %v372_v32, %v148_v31  ;;  %v223_v35 = vpop.f32.mrb[1].mxu1 }
 0x1bc   :  { %v224_v36 = vadd.f32 %v223_v35, %v143_v33 }
 0x1bd   :  { %v233_v37 = vmax.f32 %v229_v34, 0.0 }
 0x1be   :  { %v232_v38 = vmax.f32 %v224_v36, 0.0 }
 0x1c0   :  { %v385_v39 = vpack.c.bf16 %v233_v37, %v232_v38 }
 0x1c2   :  { %387 = vmatpush3.bf16.msk.msra.mxu1 %vm386_vm6, %v385_v39 }
 0x1c5   :  { %378 = vmatmul.mubr.msk.f32.vlgmr.msra.gmra.mrb[2].mxu1 %vm239_vm7, %v21_v40 }
 0x298   :  { %v313_v42 = vpop.f32.mrb[2].mxu1 }
 0x299   :  { %v314_v43 = vadd.f32 %v313_v42, %v237_v41  ;;  %v379_v44 = vpop.f32.mrb[3].mxu1 }
 0x29b   :  { %318 = vst.msk [vmem:[#allocation2] sm:$0x1] %vm317_vm8, %v314_v43 }
 0x29c   :  { %407 = shalt.err (!%p404_p4)
}
 0x29d   :  { %s408_s14 = scalar_lea.hbm %s509_s3, 16 }
 0x29e   :  { %p409_p5 = scmp.ne.s32.totalorder %s509_s3, %s408_s14  ;;  %p412_p6 = scmp.lt.u32.totalorder %s408_s14, %s509_s3 }
 0x2a0   :  { %p414_p7 = pnand %p412_p6, %p409_p5 }
 0x2a2   :  { %417 = shalt.err (!%p414_p7)
}
 0x2a3   :  { %328 = dma.vmem_to_hbm [thread:$0]  %s326_s10, 16, %s509_s3, [#allocation3]  }
 0x2a4   :  { %418 = dma.done.wait [#allocation3], 16  }
 0x2a5   :  { %419 = vsyncadd [#allocation3], 4294967280 }
 0x2a6   :  { %332 = vsyncpa [#allocation3], 1 }

</bundles_post_ra>
